<compile_context>
chip_gen: v7x
topology: tpu7x:2x2x1
jax: 0.10.0
libtpu: 0.0.40
codegen_flags: <defaults>
</compile_context>

<pallas_src>
import jax
import jax.numpy as jnp
from jax.experimental import pallas as pl
from jax.experimental.pallas import tpu as pltpu


# ----------------------------------------------------------------------------
# Pallas kernel: one (band, source, row-tile) step.
# Rows = a tile of B*T frames, lanes = features.  All shapes static.
# ----------------------------------------------------------------------------
def _band_merge_kernel(x_ref, w1_ref, wvg_ref, vec_ref, o_ref):
    H = w1_ref.shape[-1]          # hidden width
    D = o_ref.shape[-1]           # 2 * out_channels * nb (natural band width)

    x = x_ref[0]                                              # (TR, E) f32

    # LayerNorm over embed_dim, one-pass stats; affine folded into W1/b1.
    inv_e = 1.0 / x.shape[-1]
    mean = jnp.sum(x, axis=-1, keepdims=True) * inv_e
    meansq = jnp.sum(x * x, axis=-1, keepdims=True) * inv_e
    var = meansq - mean * mean
    hn = (x - mean) * jax.lax.rsqrt(var + 1e-5)               # (TR, E) f32

    vecs = vec_ref[0, 0]                                      # (2, Wmax) f32
    b1 = vecs[0:1, :H]                                        # (1, H)
    bvg = vecs[1:2, :2 * D]                                   # (1, 2D)

    # Linear(E -> H) + Tanh   (bf16 MXU inputs, f32 accumulate)
    h1 = jnp.tanh(
        jnp.dot(hn.astype(jnp.bfloat16), w1_ref[0, 0],
                preferred_element_type=jnp.float32) + b1)     # (TR, H) f32

    # Fused GLU with W2/b2 folded host-side:
    #   columns [:D]  -> value projection, columns [D:2D] -> gate projection.
    y = jnp.dot(h1.astype(jnp.bfloat16), wvg_ref[0, 0],
                preferred_element_type=jnp.float32) + bvg     # (TR, 2D) f32
    val = y[:, :D]
    gate = jax.nn.sigmoid(y[:, D:])
    o_ref[0, 0] = val * gate                                  # (TR, D)


# ----------------------------------------------------------------------------
# Row-tile selection: keep blocks VMEM-friendly on v7x for large B*T.
# ----------------------------------------------------------------------------
def _pick_row_tile(bt: int) -> int:
    if bt <= 512:
        return bt
    for tr in range(512, 7, -8):          # multiples of 8, descending
        if bt % tr == 0:
            return tr
    return bt                             # fallback: single full-row block


# ----------------------------------------------------------------------------
# Wrapper: one pallas_call per band-width bucket + host-side glue.
# ----------------------------------------------------------------------------
def band_merge_forward(x, buckets, bins, out_channels):
    """x: (B, embed_dim, n_bands, n_frames) f32 -> (B, S, C, sum(bins), T) complex64."""
    B, E, NB, T = x.shape
    C = out_channels
    BT = B * T

    # (B, E, NB, T) -> (NB, B*T, E): frames/batch on sublanes, embed_dim on lanes.
    x_k = jnp.transpose(x, (2, 0, 3, 1)).reshape(NB, BT, E)

    TR = _pick_row_tile(BT)
    R = BT // TR
    per_band = [None] * NB

    for bucket in buckets:
        idxs = bucket["band_indices"]
        NB_b = len(idxs)
        D = bucket["D"]
        nb = D // (2 * C)
        half = C * nb
        S = bucket["w1"].shape[1]
        H = bucket["w1"].shape[-1]
        Wmax = bucket["vecs"].shape[-1]

        xb = jnp.take(x_k, jnp.asarray(idxs, dtype=jnp.int32), axis=0)  # (NB_b, BT, E)

        out = pl.pallas_call(
            _band_merge_kernel,
            out_shape=jax.ShapeDtypeStruct((NB_b, S, BT, D), jnp.float32),
            grid_spec=pltpu.PrefetchScalarGridSpec(
                num_scalar_prefetch=0,
                grid=(NB_b, S, R),            # source inside band; row tiles innermost
                in_specs=[
                    # Activation block: index constant across the source axis
                    # -> stays VMEM-resident (no re-DMA) when R == 1.
                    pl.BlockSpec((1, TR, E), lambda b, s, r: (b, r, 0)),
                    # Weights: independent of the row axis -> resident across row tiles.
                    pl.BlockSpec((1, 1, E, H), lambda b, s, r: (b, s, 0, 0)),
                    pl.BlockSpec((1, 1, H, 2 * D), lambda b, s, r: (b, s, 0, 0)),
                    pl.BlockSpec((1, 1, 2, Wmax), lambda b, s, r: (b, s, 0, 0)),
                ],
                out_specs=pl.BlockSpec((1, 1, TR, D), lambda b, s, r: (b, s, r, 0)),
            ),
            compiler_params=pltpu.CompilerParams(
                dimension_semantics=("parallel", "parallel", "parallel"),
                vmem_limit_bytes=48 * 1024 * 1024,   # > scoped defaults, < v7x physical
            ),
        )(xb, bucket["w1"], bucket["wvg"], bucket["vecs"])

        # Glue for the whole bucket at once (equal widths): GLU output columns
        # were permuted host-side so real parts occupy [:half], imags [half:2*half].
        yc = jax.lax.complex(out[..., :half], out[..., half:])     # (NB_b, S, BT, half)
        yc = yc.reshape(NB_b, S, B, T, half)
        yc = jnp.transpose(yc, (0, 2, 1, 4, 3))                    # (NB_b, B, S, half, T)
        yc = yc.reshape(NB_b, B, S, C, nb, T)
        for j, bi in enumerate(idxs):
            per_band[bi] = yc[j]

    return jnp.concatenate(per_band, axis=-2)                      # (B, S, C, sum(bins), T)


# ----------------------------------------------------------------------------
# Raw (PyTorch-layout) parameters, deterministic.
# ----------------------------------------------------------------------------
def init_params(key, num_sources, out_channels, bins, embed_dim, hidden_channels):
    S, NB, E, H, C = num_sources, len(bins), embed_dim, hidden_channels, out_channels
    keys = jax.random.split(key, S * NB)
    raw = []
    for s in range(S):
        bands = []
        for bi, nb in enumerate(bins):
            D = 2 * C * nb
            k = jax.random.split(keys[s * NB + bi], 10)
            p = dict(
                gamma=(1.0 + 0.1 * jax.random.normal(k[0], (E,))).astype(jnp.float32),
                beta=(0.1 * jax.random.normal(k[1], (E,))).astype(jnp.float32),
                w1=(0.1 * jax.random.normal(k[2], (E, H))).astype(jnp.float32),
                b1=(0.1 * jax.random.normal(k[3], (H,))).astype(jnp.float32),
                w2=(0.1 * jax.random.normal(k[4], (H, D))).astype(jnp.float32),
                b2=(0.1 * jax.random.normal(k[5], (D,))).astype(jnp.float32),
                wv=(0.1 * jax.random.normal(k[6], (D, D))).astype(jnp.float32),
                bv=(0.1 * jax.random.normal(k[7], (D,))).astype(jnp.float32),
                wg=(0.1 * jax.random.normal(k[8], (D, D))).astype(jnp.float32),
                bg=(0.1 * jax.random.normal(k[9], (D,))).astype(jnp.float32),
            )
            bands.append(p)
        raw.append(bands)
    return raw


# ----------------------------------------------------------------------------
# Host-side parameter preparation:
#   * fold LN affine into W1/b1
#   * permute GLU output columns (reals first, imags second)
#   * fold W2/b2 into the GLU projections (f32), fuse value/gate weights
#   * pack biases into one (2, Wmax) ref, cast weights to bf16 once
#   * bucket bands by their natural width D = 2*C*nb (no lane padding)
# ----------------------------------------------------------------------------
def prepare_kernel_params(raw, bins, out_channels, embed_dim, hidden_channels):
    S = len(raw)
    C = out_channels
    H = hidden_channels

    order = {}
    for bi, nb in enumerate(bins):
        order.setdefault(2 * C * nb, []).append(bi)

    buckets = []
    for D, idxs in sorted(order.items()):
        Wmax = max(H, 2 * D)
        w1_l, wvg_l, vec_l = [], [], []
        for bi in idxs:
            for s in range(S):
                p = raw[s][bi]
                # LayerNorm affine folded into Linear1:
                #   (hn*gamma + beta)@W1 + b1 == hn@(diag(gamma)W1) + (b1 + beta@W1)
                w1f = p["gamma"][:, None] * p["w1"]                    # (E, H)
                b1f = p["b1"] + p["beta"] @ p["w1"]                    # (H,)
                # GLU output-column permutation: [re_0..re_{half-1}, im_0..im_{half-1}]
                perm = jnp.concatenate([jnp.arange(0, D, 2), jnp.arange(1, D, 2)])
                wv, bv = p["wv"][:, perm], p["bv"][perm]
                wg, bg = p["wg"][:, perm], p["bg"][perm]
                # Fold Linear2 (W2, b2) into the GLU projections (all in f32):
                #   val = (h1@W2 + b2)@Wv + bv == h1@(W2@Wv) + (b2@Wv + bv)
                wv_f = p["w2"] @ wv                                    # (H, D)
                bv_f = p["b2"] @ wv + bv                               # (D,)
                wg_f = p["w2"] @ wg
                bg_f = p["b2"] @ wg + bg
                wvg = jnp.concatenate([wv_f, wg_f], axis=1)            # (H, 2D)
                vec = (jnp.zeros((2, Wmax), jnp.float32)
                       .at[0, :H].set(b1f)
                       .at[1, :2 * D].set(jnp.concatenate([bv_f, bg_f])))
                w1_l.append(w1f)
                wvg_l.append(wvg)
                vec_l.append(vec)

        NB_b = len(idxs)

        def stk(lst, dtype):
            return jnp.stack(lst).reshape((NB_b, S) + lst[0].shape).astype(dtype)

        buckets.append(dict(
            D=D,
            band_indices=idxs,
            w1=stk(w1_l, jnp.bfloat16),
            wvg=stk(wvg_l, jnp.bfloat16),
            vecs=stk(vec_l, jnp.float32),
        ))
    return buckets


# ----------------------------------------------------------------------------
# Pure-JAX f32 reference (mirrors the PyTorch module, incl. audyn GLU =
# two Linear(D,D) projections) for correctness checking.
# ----------------------------------------------------------------------------
def reference(x, raw, bins, out_channels):
    B, E, NB, T = x.shape
    S, C = len(raw), out_channels
    outs = []
    for s in range(S):
        bands = []
        for bi, nb in enumerate(bins):
            p = raw[s][bi]
            xb = jnp.transpose(x[:, :, bi, :], (0, 2, 1))              # (B, T, E)
            mean = xb.mean(-1, keepdims=True)
            var = ((xb - mean) ** 2).mean(-1, keepdims=True)
            h = (xb - mean) * jax.lax.rsqrt(var + 1e-5)
            h = h * p["gamma"] + p["beta"]
            h1 = jnp.tanh(h @ p["w1"] + p["b1"])
            z = h1 @ p["w2"] + p["b2"]
            val = z @ p["wv"] + p["bv"]
            gate = jax.nn.sigmoid(z @ p["wg"] + p["bg"])
            y = (val * gate).reshape(B, T, C * nb, 2)
            yc = jax.lax.complex(y[..., 0], y[..., 1])                 # (B, T, C*nb)
            yc = jnp.transpose(yc, (0, 2, 1)).reshape(B, C, nb, T)
            bands.append(yc)
        outs.append(jnp.concatenate(bands, axis=-2))
    return jnp.stack(outs, axis=1)


if __name__ == "__main__":
    num_sources = 2
    out_channels = 2
    bins = [4, 6, 6]          # non-overlapping integer bins -> simple concat path
    embed_dim = 32
    hidden_channels = 32
    n_frames = 8
    batch = 2

    key = jax.random.PRNGKey(0)
    kx, kp = jax.random.split(key)
    x = jax.random.normal(kx, (batch, embed_dim, len(bins), n_frames), dtype=jnp.float32)

    raw = init_params(kp, num_sources, out_channels, bins, embed_dim, hidden_channels)
    buckets = prepare_kernel_params(raw, bins, out_channels, embed_dim, hidden_channels)

    out = band_merge_forward(x, buckets, bins, out_channels)
    out = jax.block_until_ready(out)

    assert out.shape == (batch, num_sources, out_channels, sum(bins), n_frames)
    assert out.dtype == jnp.complex64

    ref = reference(x, raw, bins, out_channels)
    # bf16 MXU weights + host-side f32 folds vs f32 reference -> loosened tolerance.
    assert jnp.allclose(out, ref, atol=2e-2, rtol=2e-2)

    print("KERNEL_OK")
</pallas_src>

<mosaic_0001>
module attributes {stable_mosaic.version = 11 : i64} {
  func.func @_band_merge_kernel(%arg0: i32, %arg1: i32, %arg2: i32, %arg3: memref<1x16x32xf32, #tpu.memory_space<vmem>>, %arg4: memref<1x1x32x32xbf16, #tpu.memory_space<vmem>>, %arg5: memref<1x1x32x32xbf16, #tpu.memory_space<vmem>>, %arg6: memref<1x1x2x32xf32, #tpu.memory_space<vmem>>, %arg7: memref<1x1x16x16xf32, #tpu.memory_space<vmem>>) attributes {dimension_semantics = [#tpu.dimension_semantics<parallel>, #tpu.dimension_semantics<parallel>, #tpu.dimension_semantics<parallel>], iteration_bounds = array<i64: 1, 2, 1>, scalar_prefetch = 0 : i64, scratch_operands = 0 : i64, tpu.core_type = #tpu.core_type<tc>, window_params = [{transform_indices = @transform_0, window_bounds = array<i64: 1, 16, 32>}, {transform_indices = @transform_1, window_bounds = array<i64: 1, 1, 32, 32>}, {transform_indices = @transform_2, window_bounds = array<i64: 1, 1, 32, 32>}, {transform_indices = @transform_3, window_bounds = array<i64: 1, 1, 2, 32>}, {transform_indices = @transform_4, window_bounds = array<i64: 1, 1, 16, 16>}]} {
    %c0 = arith.constant 0 : index
    %c0_0 = arith.constant 0 : index
    %c0_1 = arith.constant 0 : index
    %0 = vector.load %arg3[%c0, %c0_0, %c0_1] : memref<1x16x32xf32, #tpu.memory_space<vmem>>, vector<1x16x32xf32>
    %1 = vector.shape_cast %0 : vector<1x16x32xf32> to vector<16x32xf32>
    %cst = arith.constant dense<0.000000e+00> : vector<16xf32>
    %2 = vector.multi_reduction <add>, %1, %cst [1] : vector<16x32xf32> to vector<16xf32>
    %3 = vector.shape_cast %2 : vector<16xf32> to vector<16x1xf32>
    %cst_2 = arith.constant 3.125000e-02 : f32
    %4 = vector.broadcast %cst_2 : f32 to vector<16x1xf32>
    %5 = arith.mulf %3, %4 : vector<16x1xf32>
    %6 = arith.mulf %1, %1 : vector<16x32xf32>
    %cst_3 = arith.constant dense<0.000000e+00> : vector<16xf32>
    %7 = vector.multi_reduction <add>, %6, %cst_3 [1] : vector<16x32xf32> to vector<16xf32>
    %8 = vector.shape_cast %7 : vector<16xf32> to vector<16x1xf32>
    %cst_4 = arith.constant 3.125000e-02 : f32
    %9 = vector.broadcast %cst_4 : f32 to vector<16x1xf32>
    %10 = arith.mulf %8, %9 : vector<16x1xf32>
    %11 = arith.mulf %5, %5 : vector<16x1xf32>
    %12 = arith.subf %10, %11 : vector<16x1xf32>
    %13 = vector.broadcast %5 : vector<16x1xf32> to vector<16x32xf32>
    %14 = arith.subf %1, %13 : vector<16x32xf32>
    %cst_5 = arith.constant 9.99999974E-6 : f32
    %15 = vector.broadcast %cst_5 : f32 to vector<16x1xf32>
    %16 = arith.addf %12, %15 : vector<16x1xf32>
    %17 = math.rsqrt %16 : vector<16x1xf32>
    %18 = vector.broadcast %17 : vector<16x1xf32> to vector<16x32xf32>
    %19 = arith.mulf %14, %18 : vector<16x32xf32>
    %c0_6 = arith.constant 0 : index
    %c0_7 = arith.constant 0 : index
    %c0_8 = arith.constant 0 : index
    %c0_9 = arith.constant 0 : index
    %20 = vector.load %arg6[%c0_6, %c0_7, %c0_8, %c0_9] : memref<1x1x2x32xf32, #tpu.memory_space<vmem>>, vector<1x1x2x32xf32>
    %21 = vector.shape_cast %20 : vector<1x1x2x32xf32> to vector<2x32xf32>
    %22 = vector.extract_strided_slice %21 {offsets = [0, 0], sizes = [1, 32], strides = [1, 1]} : vector<2x32xf32> to vector<1x32xf32>
    %23 = vector.extract_strided_slice %21 {offsets = [1, 0], sizes = [1, 32], strides = [1, 1]} : vector<2x32xf32> to vector<1x32xf32>
    %24 = arith.truncf %19 : vector<16x32xf32> to vector<16x32xbf16>
    %c0_10 = arith.constant 0 : index
    %c0_11 = arith.constant 0 : index
    %c0_12 = arith.constant 0 : index
    %c0_13 = arith.constant 0 : index
    %25 = vector.load %arg4[%c0_10, %c0_11, %c0_12, %c0_13] : memref<1x1x32x32xbf16, #tpu.memory_space<vmem>>, vector<1x1x32x32xbf16>
    %26 = vector.shape_cast %25 : vector<1x1x32x32xbf16> to vector<32x32xbf16>
    %cst_14 = arith.constant dense<0.000000e+00> : vector<16x32xf32>
    %27 = tpu.matmul %24, %26, %cst_14 {dimension_numbers = #tpu.dot_dimension_numbers<[1], [0], [0], [1], [0, 0, 1, 1], [], []>} : vector<16x32xbf16>, vector<32x32xbf16>, vector<16x32xf32> -> vector<16x32xf32>
    %28 = vector.broadcast %22 : vector<1x32xf32> to vector<16x32xf32>
    %29 = arith.addf %27, %28 : vector<16x32xf32>
    %30 = math.tanh %29 : vector<16x32xf32>
    %31 = arith.truncf %30 : vector<16x32xf32> to vector<16x32xbf16>
    %c0_15 = arith.constant 0 : index
    %c0_16 = arith.constant 0 : index
    %c0_17 = arith.constant 0 : index
    %c0_18 = arith.constant 0 : index
    %32 = vector.load %arg5[%c0_15, %c0_16, %c0_17, %c0_18] : memref<1x1x32x32xbf16, #tpu.memory_space<vmem>>, vector<1x1x32x32xbf16>
    %33 = vector.shape_cast %32 : vector<1x1x32x32xbf16> to vector<32x32xbf16>
    %cst_19 = arith.constant dense<0.000000e+00> : vector<16x32xf32>
    %34 = tpu.matmul %31, %33, %cst_19 {dimension_numbers = #tpu.dot_dimension_numbers<[1], [0], [0], [1], [0, 0, 1, 1], [], []>} : vector<16x32xbf16>, vector<32x32xbf16>, vector<16x32xf32> -> vector<16x32xf32>
    %35 = vector.broadcast %23 : vector<1x32xf32> to vector<16x32xf32>
    %36 = arith.addf %34, %35 : vector<16x32xf32>
    %37 = vector.extract_strided_slice %36 {offsets = [0, 0], sizes = [16, 16], strides = [1, 1]} : vector<16x32xf32> to vector<16x16xf32>
    %38 = vector.extract_strided_slice %36 {offsets = [0, 16], sizes = [16, 16], strides = [1, 1]} : vector<16x32xf32> to vector<16x16xf32>
    %39 = arith.negf %38 : vector<16x16xf32>
    %40 = math.exp %39 : vector<16x16xf32>
    %cst_20 = arith.constant 1.000000e+00 : f32
    %41 = vector.broadcast %cst_20 : f32 to vector<16x16xf32>
    %42 = arith.addf %41, %40 : vector<16x16xf32>
    %43 = arith.divf %41, %42 : vector<16x16xf32>
    %44 = arith.mulf %37, %43 : vector<16x16xf32>
    %c0_21 = arith.constant 0 : index
    %c0_22 = arith.constant 0 : index
    %c0_23 = arith.constant 0 : index
    %c0_24 = arith.constant 0 : index
    %45 = vector.load %arg7[%c0_21, %c0_22, %c0_23, %c0_24] : memref<1x1x16x16xf32, #tpu.memory_space<vmem>>, vector<1x1x16x16xf32>
    %46 = vector.shape_cast %45 : vector<1x1x16x16xf32> to vector<16x16xf32>
    %47 = vector.shape_cast %44 : vector<16x16xf32> to vector<1x1x16x16xf32>
    tpu.vector_store %arg7[%c0_21, %c0_22, %c0_23, %c0_24], %47 {strides = array<i32>} : memref<1x1x16x16xf32, #tpu.memory_space<vmem>>, vector<1x1x16x16xf32>,
    return
  }
  func.func @transform_0(%arg0: i32, %arg1: i32, %arg2: i32) -> (i32, i32, i32) {
    %c0_i32 = arith.constant 0 : i32
    %c0_i32_0 = arith.constant 0 : i32
    return %arg0, %arg2, %c0_i32 : i32, i32, i32
  }
  func.func @transform_1(%arg0: i32, %arg1: i32, %arg2: i32) -> (i32, i32, i32, i32) {
    %c0_i32 = arith.constant 0 : i32
    %c0_i32_0 = arith.constant 0 : i32
    %c0_i32_1 = arith.constant 0 : i32
    return %arg0, %arg1, %c0_i32, %c0_i32_0 : i32, i32, i32, i32
  }
  func.func @transform_2(%arg0: i32, %arg1: i32, %arg2: i32) -> (i32, i32, i32, i32) {
    %c0_i32 = arith.constant 0 : i32
    %c0_i32_0 = arith.constant 0 : i32
    %c0_i32_1 = arith.constant 0 : i32
    return %arg0, %arg1, %c0_i32, %c0_i32_0 : i32, i32, i32, i32
  }
  func.func @transform_3(%arg0: i32, %arg1: i32, %arg2: i32) -> (i32, i32, i32, i32) {
    %c0_i32 = arith.constant 0 : i32
    %c0_i32_0 = arith.constant 0 : i32
    %c0_i32_1 = arith.constant 0 : i32
    return %arg0, %arg1, %c0_i32, %c0_i32_0 : i32, i32, i32, i32
  }
  func.func @transform_4(%arg0: i32, %arg1: i32, %arg2: i32) -> (i32, i32, i32, i32) {
    %c0_i32 = arith.constant 0 : i32
    %c0_i32_0 = arith.constant 0 : i32
    return %arg0, %arg1, %arg2, %c0_i32 : i32, i32, i32, i32
  }
}

</mosaic_0001>

<bundles_post_ra>
// kernel: tpu_custom_call.1
= control target key start
LH: loop header
LB: loop body
LE: loop exit
PB: predicated region body
PF: predicated region fallthrough
CT: control target
= control target key end

     0   :  { %9 = vsyncpa [#allocation3], 0  ;;  %s1366_s0 = inlined_call_operand.hbm [shape: f32[1,16,32], index: 0, kind: input, shape index: {}]   ;;  %s1367_s1 = inlined_call_operand.hbm [shape: bf16[1,2,32,32], index: 1, kind: input, shape index: {}]   ;;  %s1368_s2 = inlined_call_operand.hbm [shape: bf16[1,2,32,32], index: 2, kind: input, shape index: {}]   ;;  %s1369_s3 = inlined_call_operand.vmem [shape: f32[1,2,2,32], index: 3, kind: input, shape index: {}]   ;;  %s1370_s4 = inlined_call_operand.hbm [shape: f32[1,2,16,16], index: 4, kind: output, shape index: {}]  }
   0x1   :  { %10 = vsyncpa [#allocation6], 0 }
   0x2   :  { %12 = vsyncpa [#allocation6 + $0x1], 0 }
   0x3   :  { %13 = vsyncpa [#allocation4], 0 }
   0x4   :  { %15 = vsyncpa [#allocation4 + $0x1], 0  ;;  %s1080_s15 = smov 0   ;;  %s1082_s16 = smov 0  }
   0x5   :  { %s1084_s17 = smov 0   ;;  %s1086_s18 = smov 0  }
   0x6   :  { %s1088_s19 = smov 0   ;;  %s1090_s20 = smov 0  }
   0x7 LB: > { %s36_s21 = sadd.s32 1, %s1036_s19  ;;  %s77_s22 = sadd.s32 1, %s1028_s17  ;;  %s1040_s20 = sphi %s1090_s20, %s21_s20   ;;  %s1036_s19 = sphi %s1088_s19, %s1396_s19   ;;  %s1032_s18 = sphi %s1086_s18, %s1395_s18   ;;  %s1028_s17 = sphi %s1084_s17, %s1394_s17   ;;  %s1024_s16 = sphi %s1082_s16, %s1393_s16   ;;  %s1020_s15 = sphi %s1080_s15, %s1392_s15  }
   0x8   : > { %p38_p0 = scmp.ge.s32.totalorder %s36_s21, 2  ;;  %p84_p1 = scmp.ne.s32.totalorder %s1028_s17, %s1024_s16 }
   0x9   : > { %p85_p2 = scmp.eq.s32.totalorder %s1040_s20, 0  ;;  %p785_p5 = scmp.lt.s32.totalorder %s1040_s20, 2 }
   0xa   : > { %s1398_s21 = smov (%p38_p0, %s36_s21), 0  ;;  %s218_s24 = sand.u32 1, %s1040_s20  }
   0xb   : > { %p86_p4 = por %p85_p2, %p84_p1  ;;  %s73_s23 = ssub.s32 %s1036_s19, %s1398_s21 }
   0xc   : > { %p75_p6 = scmp.eq.s32.totalorder %s73_s23, 0  ;;  %s220_s25 = sand.u32 1, %s1028_s17  }
   0xd   : > { %s734_s26 = sshll.u32 %s1036_s19, 8  ;;  %s1130_s28 = sshll.u32 %s220_s25, 4 }
   0xe   : > { %s1128_s27 = scalar_select %p75_p6, %s1028_s17, %s77_s22  }
   0xf   : > { %s1137_s5 = scalar_lea.hbm %s1367_s1, %s734_s26  ;;  %p1139_p7 = pnand %p785_p5, %p86_p4 }
  0x10   : > { %s222_s7 = scalar_lea.vmem [#allocation5], %s1130_s28  ;;  %s1146_s9 = scalar_lea.sflag [#allocation6], %s218_s24 }
  0x11   : > { %s231_s8 = sshll.u32 %s222_s7, 4  ;;  %s866_s10 = scalar_lea.hbm %s1137_s5, 256  ;;  %s1144_s8 = int_to_ptr.vmem [resolvable:$true] %s231_s8 }
  0x12   : > { %p867_p8 = scmp.ne.s32.totalorder %s1137_s5, %s866_s10  ;;  %p868_p9 = pneg %p1139_p7 }
  0x13   : > { %s871_s13 = scalar_lea.hbm %s1367_s1, 512  ;;  %p872_p12 = scmp.lt.u32.totalorder %s1137_s5, %s1367_s1 }
  0x14   : > { %p869_p10 = pnand %p868_p9, %p867_p8  ;;  %p873_p13 = scmp.lt.u32.totalorder %s871_s13, %s866_s10 }
  0x15   : > { %p875_p2 = scmp.lt.u32.totalorder %s866_s10, %s1137_s5 }
  0x16   : > { %p870_p11 = pneg %p869_p10  ;;  %p874_p0 = por %p873_p13, %p872_p12 }
  0x18   : > { %p876_p4 = por %p875_p2, %p874_p0 }
  0x1a   : > { %p877_p5 = pnand %p876_p4, %p870_p11 }
  0x1c   : > { %880 = shalt.err (!%p877_p5)
}
  0x1d   : > { %s881_s23 = scalar_lea.vmem %s1144_s8, 256  ;;  %s1042_s24 = smov [#allocation5]  }
  0x1e   : > { %p882_p6 = scmp.ne.s32.totalorder %s1144_s8, %s881_s23  ;;  %s886_s25 = sshll.u32 %s1042_s24, 4  ;;  %s887_s25 = int_to_ptr.vmem [resolvable:$false] %s886_s25 }
  0x1f   : > { %s888_s29 = scalar_lea.vmem %s887_s25, 512  ;;  %p889_p3 = scmp.lt.s32.totalorder %s1144_s8, %s887_s25 }
  0x20   : > { %p884_p8 = pnand %p882_p6, %p868_p9  ;;  %p890_p12 = scmp.lt.s32.totalorder %s888_s29, %s881_s23 }
  0x22   : > { %p885_p10 = pneg %p884_p8  ;;  %p891_p13 = por %p890_p12, %p889_p3 }
  0x24   : > { %p892_p0 = pnand %p891_p13, %p885_p10 }
  0x26   : > { %895 = shalt.err (!%p892_p0)
}
  0x27   : > { %s1371_s30 = smov 64   ;;  %s1044_s7 = smov 4  }
  0x28   : > { %776 = dma.hbm_to_vmem [thread:$0]  (!%p1139_p7), %s1137_s5, 256, %s1144_s8, %s1146_s9, %s1371_s30, %s1371_s30, %s1044_s7  }
  0x29   : > { %s1182_s12 = scalar_lea.hbm %s1368_s2, %s734_s26  ;;  %s245_s13 = scalar_lea.vmem [#allocation7], %s1130_s28 }
  0x2a   : > { %s254_s14 = sshll.u32 %s245_s13, 4  ;;  %s1188_s22 = sadd.s32 4294967295, %s1040_s20   ;;  %s1185_s14 = int_to_ptr.vmem [resolvable:$true] %s254_s14 }
  0x2b   : > { %s705_s23 = sadd.s32 4294967294, %s1040_s20   ;;  %p90_p3 = scmp.ne.s32.totalorder %s1024_s16, %s1020_s15 }
  0x2c   : > { %p1372_p11 = scmp.eq.s32.totalorder %s1188_s22, 0  ;;  %p174_p2 = scmp.eq.s32.totalorder %s1188_s22, 1 }
  0x2d   : > { %p180_p4 = scmp.eq.s32.totalorder %s705_s23, 1  ;;  %p706_p5 = scmp.ge.s32.totalorder %s1040_s20, 1 }
  0x2e   : > { %p1198_p6 = por %p1372_p11, %p90_p3  ;;  %p1205_p8 = por %p174_p2, %p84_p1 }
  0x2f   : > { %p1209_p10 = por %p180_p4, %p90_p3  ;;  %p187_p12 = scmp.lt.s32.totalorder %s1040_s20, 3 }
  0x30   : > { %s1377_s26 = scalar_select %p1198_p6, 1, 0 }
  0x31   : > { %s1378_s28 = scalar_select %p1205_p8, 1, 0 }
  0x32   : > { %s1379_s5 = scalar_select %p1209_p10, 1, 0 }
  0x33   : > { %p1214_p13 = pnand %p706_p5, %p187_p12  ;;  %s1045_s24 = smov [#allocation2]  }
  0x34   : > { %s204_s25 = sshll.u32 %s1045_s24, 4  ;;  %s896_s29 = scalar_lea.hbm %s1182_s12, 256  ;;  %s1218_s25 = int_to_ptr.vmem [resolvable:$true] %s204_s25 }
  0x35   : > { %s1380_s8 = scalar_select %p1214_p13, 1, 0 }
  0x36   : > { %p897_p0 = scmp.ne.s32.totalorder %s1182_s12, %s896_s29  ;;  %s901_s13 = scalar_lea.hbm %s1368_s2, 512 }
  0x37   : > { %p902_p4 = scmp.lt.u32.totalorder %s1182_s12, %s1368_s2  ;;  %p903_p5 = scmp.lt.u32.totalorder %s901_s13, %s896_s29 }
  0x38   : > { %p899_p3 = pnand %p897_p0, %p868_p9  ;;  %p905_p11 = scmp.lt.u32.totalorder %s896_s29, %s1182_s12 }
  0x39   : > { %p904_p12 = por %p903_p5, %p902_p4 }
  0x3a   : > { %p900_p2 = pneg %p899_p3 }
  0x3b   : > { %p906_p10 = por %p905_p11, %p904_p12 }
  0x3d   : > { %p907_p8 = pnand %p906_p10, %p900_p2 }
  0x3f   : > { %910 = shalt.err (!%p907_p8)
}
  0x40   : > { %s911_s24 = scalar_lea.vmem %s1185_s14, 256  ;;  %s1046_s10 = smov [#allocation7]  }
  0x41   : > { %p912_p0 = scmp.ne.s32.totalorder %s1185_s14, %s911_s24  ;;  %s916_s11 = sshll.u32 %s1046_s10, 4  ;;  %s917_s11 = int_to_ptr.vmem [resolvable:$false] %s916_s11 }
  0x42   : > { %s918_s30 = scalar_lea.vmem %s917_s11, 512  ;;  %p919_p6 = scmp.lt.s32.totalorder %s1185_s14, %s917_s11 }
  0x43   : > { %p914_p3 = pnand %p912_p0, %p868_p9  ;;  %p920_p4 = scmp.lt.s32.totalorder %s918_s30, %s911_s24 }
  0x45   : > { %p915_p1 = pneg %p914_p3  ;;  %p921_p5 = por %p920_p4, %p919_p6 }
  0x47   : > { %p922_p11 = pnand %p921_p5, %p915_p1 }
  0x49   : > { %925 = shalt.err (!%p922_p11)
}
  0x4a   : > { %s1381_s29 = smov 64   ;;  %p1382_p9 = scmp.eq.s32.totalorder %s1188_s22, 0 }
  0x4b   : > { %779 = dma.hbm_to_vmem [thread:$0]  (!%p1139_p7), %s1182_s12, 256, %s1185_s14, %s1146_s9, %s1381_s29, %s1381_s29, %s1044_s7  }
  0x4c   : > { %p1383_p8 = pneg %p1214_p13  ;;  %s926_s6 = scalar_lea.hbm %s1366_s0, 256 }
  0x4d   : > { %p927_p6 = scmp.ne.s32.totalorder %s1366_s0, %s926_s6  ;;  %p933_p12 = scmp.lt.u32.totalorder %s926_s6, %s1366_s0 }
  0x4e   : > { %p1254_p10 = pnand %p1383_p8, %p1382_p9 }
  0x50   : > { %p928_p1 = pneg %p1254_p10 }
  0x52   : > { %p929_p2 = pnand %p928_p1, %p927_p6 }
  0x54   : > { %p930_p7 = pneg %p929_p2 }
  0x56   : > { %p935_p0 = pnand %p933_p12, %p930_p7 }
  0x58   : > { %938 = shalt.err (!%p935_p0)
}
  0x59   : > { %s939_s12 = scalar_lea.vmem %s1218_s25, 256  ;;  %p947_p11 = scmp.lt.s32.totalorder %s1218_s25, %s1218_s25 }
  0x5a   : > { %p940_p3 = scmp.ne.s32.totalorder %s1218_s25, %s939_s12  ;;  %p948_p9 = scmp.lt.s32.totalorder %s939_s12, %s939_s12 }
  0x5c   : > { %p942_p4 = pnand %p940_p3, %p928_p1  ;;  %p949_p8 = por %p948_p9, %p947_p11 }
  0x5e   : > { %p943_p5 = pneg %p942_p4 }
  0x60   : > { %p950_p13 = pnand %p949_p8, %p943_p5 }
  0x62   : > { %953 = shalt.err (!%p950_p13)
}
  0x63   : > { %s1047_s14 = smov 128   ;;  %s1048_s30 = smov 8  }
  0x64   : > { %772 = dma.hbm_to_vmem [thread:$0]  (!%p1254_p10), %s1366_s0, 256, %s1218_s25, [#allocation3], %s1047_s14, %s1047_s14, %s1048_s30  }
  0x65   : > { %p1385_p6 = scmp.ne.s32.totalorder %s1380_s8, 0 }
  0x66   : > { %p1386_p1 = scmp.eq.s32.totalorder (!%p1385_p6), %s1188_s22, 0 }
  0x67   : > { %277 = sbr.rel (%p1385_p6) target bundleno = 890 (0x37a), region = 36 }
  0x6e   : > { %1007 = dma.done.wait (%p1386_p1), [#allocation3], 256   ;;  %p1387_p2 = pmov %p1386_p1 }
  0x6f   : > { %s283_s24 = sand.u32 1, %s1188_s22   ;;  %s285_s6 = sand.u32 1, %s1024_s16  }
  0x70   : > { %1009 = vsyncadd (%p1387_p2), [#allocation3], 4294967040  ;;  %s1289_s13 = sshll.u32 %s285_s6, 4  ;;  %s284_s25 = scalar_lea.sflag [#allocation6], %s283_s24 }
  0x71   : > { %s287_s10 = scalar_lea.vmem [#allocation5], %s1289_s13  ;;  %p1388_p13 = scmp.ne.s32.totalorder %s1377_s26, 0 }
  0x73   : > { %1011 = dma.done.wait (%p1388_p13), %s284_s25, 512  }
  0x74   : > { %1013 = vsyncadd (%p1388_p13), %s284_s25, 4294966784  ;;  %vm347_vm0 = vcmask 261120   ;;  %v345_v0 = vld [vmem:[#allocation2] sm:$0xff]  ;;  %v346_v1 = vld [vmem:[#allocation2 + $0x8] sm:$0xff]  ;;  %v1049_v9 = vmov 0.0   ;;  %vm1050_vm1 = vmmov 0   ;;  %v384_v34 = vlaneseq }
  0x75   : > { %v348_v2 = vsel %vm347_vm0, %v345_v0, 0.0  ;;  %v356_v3 = vmul.f32 %v345_v0, %v345_v0  ;;  %v357_v4 = vmul.f32 %v346_v1, %v346_v1  ;;  %v351_v6 = vsel %vm347_vm0, %v346_v1, 0.0  ;;  %v846_v8 = vld [vmem:[%s287_s10] sm:$0xff]   ;;  %743 = vmatprep.subr.bf16.mxu0 %v1049_v9  ;;  %747 = vmatprep.mubr.msk.bf16.mxu0 %vm1050_vm1, %v1049_v9  ;;  %v847_v10 = vld [vmem:[%s287_s10 + $0x8] sm:$0xff]   ;;  %s296_s22 = scalar_lea.vmem [#allocation7], %s1289_s13  ;;  %p337_p10 = scmp.lt.s32.totalorder %s1032_s18, 1 }
  0x76   : > { %349 = vadd.xlane.f32.xlu0 %v348_v2  ;;  %744 = vmatpush3.bf16.msra.mxu0 %v846_v8  ;;  %v848_v32 = vld [vmem:[%s296_s22] sm:$0xff]   ;;  %v849_v33 = vld [vmem:[%s296_s22 + $0x8] sm:$0xff]   ;;  %v385_v35 = vshrl.u32 %v384_v34, 7  ;;  %s1051_s12 = smov 112   ;;  %s333_s14 = scalar_lea.vmem [#allocation8], %s1289_s13  ;;  %vm533_vm2 = vcmask 130048  }
  0x77   : > { %v358_v5 = vsel %vm347_vm0, %v356_v3, 0.0  ;;  %v361_v7 = vsel %vm347_vm0, %v357_v4, 0.0  ;;  %751 = vmatprep.subr.bf16.mxu1 %v1049_v9  ;;  %745 = vmatprep.subr.bf16.mxu0 %v1049_v9  ;;  %s338_s26 = scalar_select %p337_p10, %s1032_s18, 1 }
  0x78   : > { %359 = vadd.xlane.f32.xlu1 %v358_v5  ;;  %755 = vmatprep.mubr.msk.bf16.mxu1 %vm1050_vm1, %v1049_v9  ;;  %v386_v36 = vsub.s32 0, %v385_v35  ;;  %v453_v48 = vsub.s32 1, %v385_v35  ;;  %s554_s30 = sshll.u32 %s333_s14, 4  ;;  %s736_s29 = sshll.u32 %s1032_s18, 8  ;;  %s1310_s30 = int_to_ptr.vmem [resolvable:$true] %s554_s30 }
  0x79   : > { %752 = vmatpush3.bf16.msra.mxu1 %v848_v32  ;;  %s720_s8 = sshll.u32 %s338_s26, 1  ;;  %s1315_s25 = scalar_lea.hbm %s1370_s4, %s736_s29 }
  0x7a   : > { %352 = vadd.xlane.f32.xlu0 %v351_v6  ;;  %746 = vmatpush3.bf16.msra.mxu0 %v847_v10  ;;  %s342_s7 = scalar_lea.vmem %s1369_s3, %s720_s8  ;;  %s1319_s13 = scalar_lea.sflag [#allocation4], %s285_s6 }
  0x7b   : > { %753 = vmatprep.subr.bf16.mxu1 %v1049_v9  ;;  %v378_v37 = vld [vmem:[%s342_s7] sm:$0x3]  ;;  %s954_s18 = scalar_lea.vmem %s1310_s30, 256  ;;  %p1389_p12 = scmp.ne.s32.totalorder %s1378_s28, 0 }
  0x7c   : > { %362 = vadd.xlane.f32.xlu1 %v361_v7  ;;  %v387_v38 = vrot.slane %v378_v37, %v386_v36  ;;  %v454_v49 = vrot.slane %v378_v37, %v453_v48  ;;  %p955_p7 = scmp.ne.s32.totalorder %s1310_s30, %s954_s18  ;;  %s1052_s10 = smov [#allocation8]  }
  0x7d   : > { %754 = vmatpush3.bf16.msra.mxu1 %v849_v33  ;;  %s958_s22 = sshll.u32 %s1052_s10, 4  ;;  %s959_s22 = int_to_ptr.vmem [resolvable:$false] %s958_s22 }
  0x7e   : > { %p956_p0 = pnand %p955_p7, %p1389_p12  ;;  %s960_s26 = scalar_lea.vmem %s959_s22, 512 }
  0x7f   : > { %p961_p4 = scmp.lt.s32.totalorder %s1310_s30, %s959_s22  ;;  %p962_p5 = scmp.lt.s32.totalorder %s960_s26, %s954_s18 }
  0x80   : > { %p957_p3 = pneg %p956_p0 }
  0x81   : > { %p963_p11 = por %p962_p5, %p961_p4 }
  0x83   : > { %p964_p9 = pnand %p963_p11, %p957_p3 }
 0x103   : > { %v350_v11 = vpop.xlane.xlu0 %349 }
 0x104   : > { %v354_v12 = vmul.f32 0.03125, %v350_v11 }
 0x105   : > { %v360_v13 = vpop.xlane.xlu1 %359 }
 0x106   : > { %v366_v14 = vmul.f32 %v354_v12, %v354_v12  ;;  %v364_v15 = vmul.f32 0.03125, %v360_v13  ;;  %v370_v26 = vsub.f32 %v345_v0, %v354_v12 }
 0x107   : > { %v353_v16 = vpop.xlane.xlu0 %352 }
 0x108   : > { %v368_v17 = vsub.f32 %v364_v15, %v366_v14  ;;  %v355_v18 = vmul.f32 0.03125, %v353_v16 }
 0x109   : > { %v363_v19 = vpop.xlane.xlu1 %362 }
 0x10a   : > { %v372_v20 = vadd.f32 1e-05, %v368_v17  ;;  %v367_v21 = vmul.f32 %v355_v18, %v355_v18  ;;  %v365_v22 = vmul.f32 0.03125, %v363_v19  ;;  %v371_v27 = vsub.f32 %v346_v1, %v355_v18 }
 0x10c   : > { %v369_v23 = vsub.f32 %v365_v22, %v367_v21  ;;  %850 = vrsqrt.f32 %v372_v20 }
 0x10e   : > { %v373_v24 = vadd.f32 1e-05, %v369_v23 }
 0x110   : > { %852 = vrsqrt.f32 %v373_v24 }
 0x116   : > { %v851_v25 = vpop.eup %850 }
 0x117   : > { %v376_v29 = vmul.f32 %v851_v25, %v370_v26 }
 0x11a   : > { %v853_v28 = vpop.eup %852 }
 0x11b   : > { %v377_v30 = vmul.f32 %v853_v28, %v371_v27 }
 0x11d   : > { %v379_v31 = vpack.c.bf16 %v377_v30, %v376_v29 }
 0x11f   : > { %748 = vmatmul.mubr.msk.bf16.vlgmr.msra.gmra.mrb[0].mxu0 %vm347_vm0, %v379_v31 }
 0x1f2   : > { %v437_v39 = vpop.f32.mrb[0].mxu0 }
 0x1f3   : > { %v438_v40 = vadd.f32 %v437_v39, %v387_v38  ;;  %v749_v41 = vpop.f32.mrb[1].mxu0 }
 0x1f4   : > { %v440_v42 = vpop.f32.mrb[2].mxu0 }
 0x1f5   : > { %v441_v43 = vadd.f32 %v440_v42, %v387_v38  ;;  %v750_v44 = vpop.f32.mrb[3].mxu0  ;;  %854 = vtanh.f32 %v438_v40 }
 0x1f7   : > { %856 = vtanh.f32 %v441_v43 }
 0x1ff   : > { %v855_v45 = vpop.eup %854 }
 0x201   : > { %v857_v46 = vpop.eup %856 }
 0x202   : > { %v446_v47 = vpack.c.bf16 %v857_v46, %v855_v45 }
 0x204   : > { %756 = vmatmul.mubr.msk.bf16.vlgmr.msra.gmra.mrb[0].mxu1 %vm347_vm0, %v446_v47 }
 0x2d7   : > { %v504_v50 = vpop.f32.mrb[0].mxu1 }
 0x2d8   : > { %v505_v51 = vadd.f32 %v504_v50, %v454_v49  ;;  %v757_v52 = vpop.f32.mrb[1].mxu1 }
 0x2d9   : > { %v507_v53 = vpop.f32.mrb[2].mxu1 }
 0x2da   : > { %v727_v54 = vmul.f32 -1.442695, %v505_v51  ;;  %v508_v55 = vadd.f32 %v507_v53, %v454_v49  ;;  %v758_v56 = vpop.f32.mrb[3].mxu1 }
 0x2dc   : > { %858 = vpow2.f32 %v727_v54  ;;  %v728_v57 = vmul.f32 -1.442695, %v508_v55 }
 0x2de   : > { %860 = vpow2.f32 %v728_v57 }
 0x2e6   : > { %v859_v58 = vpop.eup %858 }
 0x2e7   : > { %v517_v59 = vadd.f32 1.0, %v859_v58 }
 0x2e8   : > { %v861_v60 = vpop.eup %860 }
 0x2e9   : > { %862 = vrcp.f32 %v517_v59  ;;  %v518_v61 = vadd.f32 1.0, %v861_v60 }
 0x2eb   : > { %864 = vrcp.f32 %v518_v61 }
 0x2f3   : > { %v863_v62 = vpop.eup %862 }
 0x2f4   : > { %525 = vrot.lane.b32.xlu0 %v863_v62, %s1051_s12 }
 0x2f5   : > { %v865_v63 = vpop.eup %864 }
 0x2f6   : > { %527 = vrot.lane.b32.xlu1 %v865_v63, %s1051_s12 }
 0x366   : > { %v526_v0 = vpop.permute.xlu0 %525 }
 0x367   : > { %v531_v1 = vmul.f32 %v526_v0, %v505_v51 }
 0x368   : > { %v528_v2 = vpop.permute.xlu1 %527 }
 0x369   : > { %534 = vst.msk [vmem:[%s333_s14] sm:$0xff] %vm533_vm2, %v531_v1  ;;  %v532_v3 = vmul.f32 %v528_v2, %v508_v55 }
 0x36b   : > { %535 = vst.msk [vmem:[%s333_s14 + $0x8] sm:$0xff] %vm533_vm2, %v532_v3 }
 0x36c   : > { %967 = shalt.err (!%p964_p9)
}
 0x36d   : > { %s968_s6 = scalar_lea.hbm %s1315_s25, 256  ;;  %s972_s9 = scalar_lea.hbm %s1370_s4, 512 }
 0x36e   : > { %p969_p8 = scmp.ne.s32.totalorder %s1315_s25, %s968_s6  ;;  %p973_p2 = scmp.lt.u32.totalorder %s1315_s25, %s1370_s4 }
 0x36f   : > { %p974_p13 = scmp.lt.u32.totalorder %s972_s9, %s968_s6  ;;  %p976_p7 = scmp.lt.u32.totalorder %s968_s6, %s1315_s25 }
 0x370   : > { %p970_p6 = pnand %p969_p8, %p1389_p12 }
 0x371   : > { %p975_p10 = por %p974_p13, %p973_p2 }
 0x372   : > { %p971_p1 = pneg %p970_p6 }
 0x373   : > { %p977_p0 = por %p976_p7, %p975_p10 }
 0x375   : > { %p978_p3 = pnand %p977_p0, %p971_p1 }
 0x377   : > { %981 = shalt.err (!%p978_p3)
}
 0x378   : > { %s1053_s14 = smov 128   ;;  %s1054_s29 = smov 8  }
 0x379   : > { %767 = dma.vmem_to_hbm [thread:$0]  (%p1389_p12), %s1310_s30, 256, %s1315_s25, %s1319_s13, %s1053_s14, %s1053_s14, %s1054_s29  }
 0x37a PF: > { %s569_s23 = sand.u32 1, %s1020_s15   ;;  %p1390_p4 = scmp.ne.s32.totalorder %s1379_s5, 0 }
 0x37b   : > { %p1391_p5 = scmp.ge.s32.totalorder %s1040_s20, 2  ;;  %s570_s24 = scalar_lea.sflag [#allocation4], %s569_s23 }
 0x37d   : > { %p781_p11 = pnand %p1391_p5, %p1390_p4 }
 0x37f   : > { %1015 = dma.done.wait (!%p781_p11), %s570_s24, 256  }
 0x380   : > { %1017 = vsyncadd (!%p781_p11), %s570_s24, 4294967040  ;;  %s21_s20 = sadd.s32 1, %s1040_s20   ;;  %s1392_s15 = smov %s1024_s16 }
 0x381   : > { %p18_p9 = scmp.ge.s32.totalorder %s21_s20, 4   ;;  %s1393_s16 = smov %s1028_s17 }
 0x382   : > { %s1394_s17 = smov %s1128_s27  ;;  %s1395_s18 = smov %s1036_s19 }
 0x383   : > { %s1396_s19 = smov %s1398_s21  ;;  %20 = sbr.rel (!%p18_p9) target bundleno = 7 (0x7), region = 101 }
 0x38a   :  { %575 = vsyncpa [#allocation3], 1 }
 0x38b   :  { %577 = vsyncpa [#allocation3 + $0x1], 1 }
 0x38c   :  { %578 = vsyncpa [#allocation6], 1 }
 0x38d   :  { %580 = vsyncpa [#allocation6 + $0x1], 1 }
 0x38e   :  { %581 = vsyncpa [#allocation4], 1 }
 0x38f   :  { %583 = vsyncpa [#allocation4 + $0x1], 1 }

</bundles_post_ra>
